<compile_context>
chip_gen: v7x
topology: tpu7x:2x2x1
jax: 0.10.0
libtpu: 0.0.40
codegen_flags: <defaults>
</compile_context>

<pallas_src>
import functools

import jax
import jax.numpy as jnp
from jax import lax
from jax.experimental import pallas as pl
from jax.experimental.pallas import tpu as pltpu


LANES = 128                      # full vreg lane width; maximizes zero-copy reshapes
STRIP_ROWS = 256                 # compute sub-strip (bounds f32 temporaries to 128 KiB)
TARGET_BLOCK_BYTES = 2 * 1024 * 1024   # per-input DMA block


# -----------------------------------------------------------------------------
# Fusable elementwise losses.  Each takes (pred, tgt, diff, abs_diff) so the
# shared difference is hoisted out of the per-loss loop.
# -----------------------------------------------------------------------------
_ELEMENTWISE_LOSSES = {
    "MSELoss": lambda p, t, d, ad: d * d,
    "L1Loss": lambda p, t, d, ad: ad,
    "SmoothL1Loss": lambda p, t, d, ad: jnp.where(ad < 1.0, 0.5 * d * d, ad - 0.5),
}


def _round_down(x: int, m: int) -> int:
    return (x // m) * m


def _sum_losses_kernel(pred_ref, tgt_ref, out_ref, *, loss_fns, n, tile_rows,
                       strip_rows, num_strips, tiles_per_core, needs_mask):
    """One grid step: accumulate per-loss (8, LANES) partial sums.

    pred_ref / tgt_ref : (tile_rows, LANES) input blocks (VMEM)
    out_ref            : (num_losses * 8, LANES) f32, resident across the
                         reduction axis — used directly as the accumulator.
    """
    c = pl.program_id(0)     # "parallel" split (both TensorCores on v7x)
    i = pl.program_id(1)     # "arbitrary" reduction axis

    @pl.when(i == 0)
    def _init():
        out_ref[...] = jnp.zeros_like(out_ref)

    # Unclamped global tile index -> flat element offset of this block.  The
    # index_map clamps the DMA source; the mask below zeroes out duplicated /
    # out-of-range / padded elements, so correctness never depends on padding.
    row_base = (c * tiles_per_core + i) * tile_rows

    if needs_mask:
        row_iota = lax.broadcasted_iota(jnp.int32, (strip_rows, LANES), 0)
        lane_iota = lax.broadcasted_iota(jnp.int32, (strip_rows, LANES), 1)
        strip_flat = row_iota * LANES + lane_iota   # flat offset within a strip

    def process_strip(s):
        r0 = s * strip_rows
        if not isinstance(s, int):
            r0 = pl.multiple_of(r0, strip_rows)
        p = pred_ref[pl.ds(r0, strip_rows), :].astype(jnp.float32)
        t = tgt_ref[pl.ds(r0, strip_rows), :].astype(jnp.float32)
        d = p - t                       # shared difference, hoisted
        ad = jnp.abs(d)                 # DCE'd if no loss uses it
        if needs_mask:
            remaining = n - (row_base + r0) * LANES
            mask = strip_flat < remaining
        for j, fn in enumerate(loss_fns):
            vals = fn(p, t, d, ad)
            if needs_mask:
                vals = jnp.where(mask, vals, 0.0)
            # Full-vreg accumulation: keep 8 sublanes, collapse in the wrapper.
            part = vals.reshape(strip_rows // 8, 8, LANES).sum(axis=0)
            out_ref[pl.ds(8 * j, 8), :] += part

    if num_strips == 1:
        process_strip(0)
    else:
        @pl.loop(0, num_strips)
        def _(s):
            process_strip(s)


def sum_arbitrary_loss_forward(prediction, target, loss_fns, weights):
    """Fused SumArbitraryLoss forward: scalar total loss (float32)."""
    assert prediction.shape == target.shape, "prediction/target shape mismatch"
    n = int(prediction.size)
    assert n > 0
    num_losses = len(loss_fns)
    assert num_losses >= 1
    assert len(weights) == num_losses

    itemsize = jnp.dtype(prediction.dtype).itemsize
    sub = {4: 8, 2: 16}.get(itemsize, 32)   # sublane packing multiple per dtype

    rows = pl.cdiv(n, LANES)
    rows_alloc = max(rows, sub)             # at least one sublane tile of rows
    padded = rows_alloc * LANES

    p = prediction.reshape(-1)
    t = target.reshape(-1)
    if padded != n:
        # Rare path (n % 128 != 0 or tiny input): pad so the 2-D reshape is
        # legal.  Padded elements are masked out in-kernel, so this is purely a
        # layout concern, not a correctness one.
        # TODO(synk): a fully zero-copy path for n % 128 != 0 would need a
        # manual 1-D DMA epilogue.
        p = jnp.pad(p, (0, padded - n))
        t = jnp.pad(t, (0, padded - n))
    p2 = p.reshape(rows_alloc, LANES)        # zero-copy when padded == n
    t2 = t.reshape(rows_alloc, LANES)

    # DMA block / compute strip sizing.
    max_rows = max(STRIP_ROWS,
                   _round_down(TARGET_BLOCK_BYTES // (LANES * itemsize), STRIP_ROWS))
    if rows_alloc >= STRIP_ROWS:
        tile_rows = min(max_rows, _round_down(rows_alloc, STRIP_ROWS))
        strip_rows = STRIP_ROWS
    else:
        tile_rows = _round_down(rows_alloc, sub)
        strip_rows = tile_rows
    num_strips = tile_rows // strip_rows

    total_tiles = pl.cdiv(rows_alloc, tile_rows)
    # Split the row range across a leading "parallel" axis so both TensorCores
    # work on v7x; skip the split when there is a single tile (avoids a
    # duplicated DMA on 1-TC chips).
    num_splits = 2 if total_tiles > 1 else 1
    tiles_per_core = pl.cdiv(total_tiles, num_splits)

    # Mask only when the grid covers more elements than n (ragged tail,
    # padded lanes, or a duplicated clamped tile on the second split).
    needs_mask = (num_splits * tiles_per_core * tile_rows * LANES) != n

    kernel = functools.partial(
        _sum_losses_kernel,
        loss_fns=tuple(loss_fns), n=n, tile_rows=tile_rows,
        strip_rows=strip_rows, num_strips=num_strips,
        tiles_per_core=tiles_per_core, needs_mask=needs_mask)

    def in_map(c, i):
        # Clamp so the DMA source stays in-bounds; duplicated tiles are masked.
        return (jnp.minimum(c * tiles_per_core + i, total_tiles - 1), 0)

    cost = pl.CostEstimate(
        flops=(2 + 3 * num_losses) * n,
        transcendentals=0,
        bytes_accessed=2 * n * itemsize,
    )

    out = pl.pallas_call(
        kernel,
        out_shape=jax.ShapeDtypeStruct((num_splits, num_losses * 8, LANES),
                                       jnp.float32),
        grid=(num_splits, tiles_per_core),
        in_specs=[
            pl.BlockSpec((tile_rows, LANES), in_map),
            pl.BlockSpec((tile_rows, LANES), in_map),
        ],
        # Leading dim squeezed: kernel sees a (num_losses*8, LANES) accumulator
        # block, resident across the "arbitrary" axis, one per parallel split.
        out_specs=pl.BlockSpec((None, num_losses * 8, LANES),
                               lambda c, i: (c, 0, 0)),
        compiler_params=pltpu.CompilerParams(
            dimension_semantics=("parallel", "arbitrary")),
        cost_estimate=cost,
    )(p2, t2)

    # Tiny finalize on an 8-16 KiB array: collapse sublanes/lanes/splits, then
    # apply the torch weighting (loss_0 unweighted, weights[i] for i >= 1) and
    # the shared 'mean' divisor.
    sums = out.reshape(num_splits, num_losses, 8, LANES).sum(axis=(0, 2, 3))
    total = sums[0]
    for j in range(1, num_losses):
        total = total + float(weights[j]) * sums[j]
    return total / float(n)


class SumArbitraryLossJAX:
    """JAX/Pallas mirror of ClassyVision's SumArbitraryLoss.

    `losses` is a list of fusable elementwise loss names (see
    _ELEMENTWISE_LOSSES) or callables f(pred, tgt) -> per-element loss values
    (mean-reduced by the kernel).  `weights[0]` is ignored, matching the torch
    `.add(alpha, other)` call in the reference forward.
    """

    def __init__(self, losses, weights=None):
        if weights is None:
            weights = [1.0] * len(losses)
        assert len(weights) == len(losses), "weights must match losses length"
        self.loss_fns = []
        for l in losses:
            if callable(l):
                self.loss_fns.append(lambda p, t, d, ad, _f=l: _f(p, t))
            else:
                assert l in _ELEMENTWISE_LOSSES, f"unsupported loss: {l}"
                self.loss_fns.append(_ELEMENTWISE_LOSSES[l])
        self.weights = [float(w) for w in weights]

    def forward(self, prediction, target):
        return sum_arbitrary_loss_forward(
            prediction, target, self.loss_fns, self.weights)

    __call__ = forward


if __name__ == "__main__":
    _REF = {
        "MSELoss": lambda p, t: jnp.mean((p - t) ** 2),
        "L1Loss": lambda p, t: jnp.mean(jnp.abs(p - t)),
        "SmoothL1Loss": lambda p, t: jnp.mean(
            jnp.where(jnp.abs(p - t) < 1.0,
                      0.5 * (p - t) ** 2,
                      jnp.abs(p - t) - 0.5)),
    }

    def reference_total(pred, tgt, names, weights):
        total = _REF[names[0]](pred, tgt)
        for j in range(1, len(names)):
            total = total + weights[j] * _REF[names[j]](pred, tgt)
        return total

    key = jax.random.PRNGKey(0)

    cases = [
        # (shape, losses, weights) — covers the clean zero-copy path, the
        # dual-split + partial-block masked path, and the tiny padded path.
        ((2, 4, 16, 16), ["MSELoss", "L1Loss"], [1.0, 0.5]),
        ((2, 3, 16, 16), ["MSELoss", "L1Loss", "SmoothL1Loss"], [1.0, 0.5, 0.25]),
        ((3, 5, 7), ["L1Loss"], [1.0]),
    ]

    for idx, (shape, names, weights) in enumerate(cases):
        key, kp, kt = jax.random.split(key, 3)
        prediction = jax.random.normal(kp, shape, dtype=jnp.float32)
        target = jax.random.normal(kt, shape, dtype=jnp.float32)

        loss_mod = SumArbitraryLossJAX(losses=names, weights=weights)
        total = jax.block_until_ready(loss_mod(prediction, target))
        expected = reference_total(prediction, target, names, weights)

        assert total.shape == (), (idx, total.shape)
        assert total.dtype == jnp.float32
        assert bool(jnp.allclose(total, expected, rtol=1e-5, atol=1e-6)), (
            idx, float(total), float(expected))

    print("KERNEL_OK")
</pallas_src>

<mosaic_0001>
module attributes {stable_mosaic.version = 11 : i64} {
  func.func @_sum_losses_kernel(%arg0: i32, %arg1: i32, %arg2: memref<16x128xf32, #tpu.memory_space<vmem>>, %arg3: memref<16x128xf32, #tpu.memory_space<vmem>>, %arg4: memref<1x16x128xf32, #tpu.memory_space<vmem>>) attributes {dimension_semantics = [#tpu.dimension_semantics<parallel>, #tpu.dimension_semantics<arbitrary>], iteration_bounds = array<i64: 1, 1>, scalar_prefetch = 0 : i64, scratch_operands = 0 : i64, tpu.core_type = #tpu.core_type<tc>, window_params = [{transform_indices = @transform_0, window_bounds = array<i64: 16, 128>}, {transform_indices = @transform_1, window_bounds = array<i64: 16, 128>}, {transform_indices = @transform_2, window_bounds = array<i64: 1, 16, 128>}]} {
    %c0_i32 = arith.constant 0 : i32
    %0 = arith.cmpi eq, %arg1, %c0_i32 : i32
    %1 = arith.extui %0 : i1 to i32
    %c0_i32_0 = arith.constant 0 : i32
    %2 = arith.cmpi ne, %1, %c0_i32_0 : i32
    scf.if %2 {
      %cst_16 = arith.constant 0.000000e+00 : f32
      %24 = vector.broadcast %cst_16 : f32 to vector<16x128xf32>
      %c0_17 = arith.constant 0 : index
      %c0_18 = arith.constant 0 : index
      %c0_19 = arith.constant 0 : index
      %25 = vector.load %arg4[%c0_17, %c0_18, %c0_19] : memref<1x16x128xf32, #tpu.memory_space<vmem>>, vector<1x16x128xf32>
      %26 = vector.shape_cast %25 : vector<1x16x128xf32> to vector<16x128xf32>
      %27 = vector.shape_cast %24 : vector<16x128xf32> to vector<1x16x128xf32>
      tpu.vector_store %arg4[%c0_17, %c0_18, %c0_19], %27 {strides = array<i32>} : memref<1x16x128xf32, #tpu.memory_space<vmem>>, vector<1x16x128xf32>,
    } else {
    }
    %c0 = arith.constant 0 : index
    %c0_1 = arith.constant 0 : index
    %3 = vector.load %arg2[%c0, %c0_1] : memref<16x128xf32, #tpu.memory_space<vmem>>, vector<16x128xf32>
    %c0_2 = arith.constant 0 : index
    %c0_3 = arith.constant 0 : index
    %4 = vector.load %arg3[%c0_2, %c0_3] : memref<16x128xf32, #tpu.memory_space<vmem>>, vector<16x128xf32>
    %5 = arith.subf %3, %4 : vector<16x128xf32>
    %6 = math.absf %5 : vector<16x128xf32>
    %7 = arith.mulf %5, %5 : vector<16x128xf32>
    %8 = vector.shape_cast %7 : vector<16x128xf32> to vector<2x8x128xf32>
    %cst = arith.constant dense<0.000000e+00> : vector<8x128xf32>
    %9 = vector.multi_reduction <add>, %8, %cst [0] : vector<2x8x128xf32> to vector<8x128xf32>
    %c0_4 = arith.constant 0 : index
    %c0_5 = arith.constant 0 : index
    %c0_6 = arith.constant 0 : index
    %10 = vector.load %arg4[%c0_4, %c0_5, %c0_6] : memref<1x16x128xf32, #tpu.memory_space<vmem>>, vector<1x8x128xf32>
    %11 = vector.shape_cast %10 : vector<1x8x128xf32> to vector<8x128xf32>
    %12 = arith.addf %11, %9 : vector<8x128xf32>
    %c0_7 = arith.constant 0 : index
    %c0_8 = arith.constant 0 : index
    %c0_9 = arith.constant 0 : index
    %13 = vector.load %arg4[%c0_7, %c0_8, %c0_9] : memref<1x16x128xf32, #tpu.memory_space<vmem>>, vector<1x8x128xf32>
    %14 = vector.shape_cast %13 : vector<1x8x128xf32> to vector<8x128xf32>
    %15 = vector.shape_cast %12 : vector<8x128xf32> to vector<1x8x128xf32>
    tpu.vector_store %arg4[%c0_7, %c0_8, %c0_9], %15 {strides = array<i32>} : memref<1x16x128xf32, #tpu.memory_space<vmem>>, vector<1x8x128xf32>,
    %16 = vector.shape_cast %6 : vector<16x128xf32> to vector<2x8x128xf32>
    %cst_10 = arith.constant dense<0.000000e+00> : vector<8x128xf32>
    %17 = vector.multi_reduction <add>, %16, %cst_10 [0] : vector<2x8x128xf32> to vector<8x128xf32>
    %c0_11 = arith.constant 0 : index
    %c8 = arith.constant 8 : index
    %c0_12 = arith.constant 0 : index
    %18 = vector.load %arg4[%c0_11, %c8, %c0_12] : memref<1x16x128xf32, #tpu.memory_space<vmem>>, vector<1x8x128xf32>
    %19 = vector.shape_cast %18 : vector<1x8x128xf32> to vector<8x128xf32>
    %20 = arith.addf %19, %17 : vector<8x128xf32>
    %c0_13 = arith.constant 0 : index
    %c8_14 = arith.constant 8 : index
    %c0_15 = arith.constant 0 : index
    %21 = vector.load %arg4[%c0_13, %c8_14, %c0_15] : memref<1x16x128xf32, #tpu.memory_space<vmem>>, vector<1x8x128xf32>
    %22 = vector.shape_cast %21 : vector<1x8x128xf32> to vector<8x128xf32>
    %23 = vector.shape_cast %20 : vector<8x128xf32> to vector<1x8x128xf32>
    tpu.vector_store %arg4[%c0_13, %c8_14, %c0_15], %23 {strides = array<i32>} : memref<1x16x128xf32, #tpu.memory_space<vmem>>, vector<1x8x128xf32>,
    return
  }
  func.func @transform_0(%arg0: i32, %arg1: i32) -> (i32, i32) {
    %c1_i32 = arith.constant 1 : i32
    %0 = arith.muli %arg0, %c1_i32 : i32
    %1 = arith.addi %0, %arg1 : i32
    %c0_i32 = arith.constant 0 : i32
    %2 = arith.minsi %1, %c0_i32 : i32
    %c0_i32_0 = arith.constant 0 : i32
    %c0_i32_1 = arith.constant 0 : i32
    return %2, %c0_i32_0 : i32, i32
  }
  func.func @transform_1(%arg0: i32, %arg1: i32) -> (i32, i32) {
    %c1_i32 = arith.constant 1 : i32
    %0 = arith.muli %arg0, %c1_i32 : i32
    %1 = arith.addi %0, %arg1 : i32
    %c0_i32 = arith.constant 0 : i32
    %2 = arith.minsi %1, %c0_i32 : i32
    %c0_i32_0 = arith.constant 0 : i32
    %c0_i32_1 = arith.constant 0 : i32
    return %2, %c0_i32_0 : i32, i32
  }
  func.func @transform_2(%arg0: i32, %arg1: i32) -> (i32, i32, i32) {
    %c0_i32 = arith.constant 0 : i32
    %c0_i32_0 = arith.constant 0 : i32
    %c0_i32_1 = arith.constant 0 : i32
    return %arg0, %c0_i32, %c0_i32_0 : i32, i32, i32
  }
}

</mosaic_0001>

<bundles_post_ra>
// kernel: tpu_custom_call.1
= control target key start
LH: loop header
LB: loop body
LE: loop exit
PB: predicated region body
PF: predicated region fallthrough
CT: control target
= control target key end

     0   :  { %7 = vsyncpa [#allocation3], 0  ;;  %s249_s0 = inlined_call_operand.hbm [shape: f32[16,128], index: 0, kind: input, shape index: {}]   ;;  %s250_s1 = inlined_call_operand.hbm [shape: f32[16,128], index: 1, kind: input, shape index: {}]   ;;  %s251_s2 = inlined_call_operand.hbm [shape: f32[1,16,128], index: 2, kind: output, shape index: {}]  }
   0x1   :  { %8 = vsyncpa [#allocation6], 0 }
   0x2   :  { %9 = vsyncpa [#allocation4], 0  ;;  %s184_s9 = smov [#allocation2]   ;;  %s112_s13 = scalar_lea.hbm %s249_s0, 256 }
   0x3   :  { %s21_s10 = sshll.u32 %s184_s9, 4  ;;  %p113_p0 = scmp.ne.s32.totalorder %s249_s0, %s112_s13  ;;  %s22_s10 = int_to_ptr.vmem [resolvable:$true] %s21_s10 }
   0x4   :  { %p116_p1 = scmp.lt.u32.totalorder %s112_s13, %s249_s0 }
   0x6   :  { %p118_p2 = pnand %p116_p1, %p113_p0 }
   0x8   :  { %121 = shalt.err (!%p118_p2)
}
   0x9   :  { %s122_s18 = scalar_lea.vmem %s22_s10, 256  ;;  %p127_p4 = scmp.lt.s32.totalorder %s22_s10, %s22_s10 }
   0xa   :  { %p123_p3 = scmp.ne.s32.totalorder %s22_s10, %s122_s18  ;;  %p128_p5 = scmp.lt.s32.totalorder %s122_s18, %s122_s18 }
   0xc   :  { %p129_p6 = por %p128_p5, %p127_p4 }
   0xe   :  { %p130_p7 = pnand %p129_p6, %p123_p3 }
  0x10   :  { %133 = shalt.err (!%p130_p7)
}
  0x11   :  { %s185_s19 = smov 128   ;;  %s186_s20 = smov 8  }
  0x12   :  { %27 = dma.hbm_to_vmem [thread:$0]  %s249_s0, 256, %s22_s10, [#allocation3], %s185_s19, %s185_s19, %s186_s20  }
  0x13   :  { %s187_s23 = smov [#allocation5]   ;;  %s134_s27 = scalar_lea.hbm %s250_s1, 256 }
  0x14   :  { %s39_s24 = sshll.u32 %s187_s23, 4  ;;  %p135_p8 = scmp.ne.s32.totalorder %s250_s1, %s134_s27  ;;  %s40_s24 = int_to_ptr.vmem [resolvable:$true] %s39_s24 }
  0x15   :  { %p138_p9 = scmp.lt.u32.totalorder %s134_s27, %s250_s1 }
  0x17   :  { %p140_p10 = pnand %p138_p9, %p135_p8 }
  0x19   :  { %143 = shalt.err (!%p140_p10)
}
  0x1a   :  { %s144_s4 = scalar_lea.vmem %s40_s24, 256  ;;  %p149_p12 = scmp.lt.s32.totalorder %s40_s24, %s40_s24 }
  0x1b   :  { %p145_p11 = scmp.ne.s32.totalorder %s40_s24, %s144_s4  ;;  %p150_p13 = scmp.lt.s32.totalorder %s144_s4, %s144_s4 }
  0x1d   :  { %p151_p0 = por %p150_p13, %p149_p12 }
  0x1f   :  { %p152_p1 = pnand %p151_p0, %p145_p11 }
  0x21   :  { %155 = shalt.err (!%p152_p1)
}
  0x22   :  { %45 = dma.hbm_to_vmem [thread:$0]  %s250_s1, 256, %s40_s24, [#allocation6], %s185_s19, %s185_s19, %s186_s20  }
  0x23   :  { %178 = dma.done.wait [#allocation3], 256  }
  0x24   :  { %179 = vsyncadd [#allocation3], 4294967040 }
  0x25   :  { %180 = dma.done.wait [#allocation6], 256  }
  0x26   :  { %181 = vsyncadd [#allocation6], 4294967040  ;;  %v66_v0 = vld [vmem:[#allocation2] sm:$0xff]  ;;  %v67_v1 = vld [vmem:[#allocation2 + $0x8] sm:$0xff]  ;;  %s188_s6 = smov [#allocation7]  }
  0x27   :  { %v68_v2 = vld [vmem:[#allocation5] sm:$0xff]  ;;  %v69_v3 = vld [vmem:[#allocation5 + $0x8] sm:$0xff]  ;;  %s89_s7 = sshll.u32 %s188_s6, 4  ;;  %s90_s7 = int_to_ptr.vmem [resolvable:$true] %s89_s7 }
  0x28   :  { %v70_v4 = vsub.f32 %v66_v0, %v68_v2  ;;  %v71_v5 = vsub.f32 %v67_v1, %v69_v3  ;;  %s156_s1 = scalar_lea.vmem %s90_s7, 256  ;;  %p161_p3 = scmp.lt.s32.totalorder %s90_s7, %s90_s7 }
  0x29   :  { %p157_p2 = scmp.ne.s32.totalorder %s90_s7, %s156_s1  ;;  %p162_p4 = scmp.lt.s32.totalorder %s156_s1, %s156_s1 }
  0x2a   :  { %v74_v6 = vmul.f32 %v70_v4, %v70_v4  ;;  %v72_v7 = vand.u32 2147483647, %v70_v4  ;;  %v75_v8 = vmul.f32 %v71_v5, %v71_v5  ;;  %v73_v9 = vand.u32 2147483647, %v71_v5 }
  0x2b   :  { %p163_p5 = por %p162_p4, %p161_p3 }
  0x2c   :  { %v76_v10 = vadd.f32 %v75_v8, %v74_v6  ;;  %v80_v11 = vadd.f32 %v73_v9, %v72_v7 }
  0x2d   :  { %p164_p6 = pnand %p163_p5, %p157_p2 }
  0x2e   :  { %79 = vst [vmem:[#allocation7] sm:$0xff] %v76_v10  ;;  %83 = vst [vmem:[#allocation7 + $0x8] sm:$0xff] %v80_v11 }
  0x2f   :  { %167 = shalt.err (!%p164_p6)
}
  0x30   :  { %s168_s10 = scalar_lea.hbm %s251_s2, 256 }
  0x31   :  { %p169_p7 = scmp.ne.s32.totalorder %s251_s2, %s168_s10  ;;  %p172_p8 = scmp.lt.u32.totalorder %s168_s10, %s251_s2 }
  0x33   :  { %p174_p9 = pnand %p172_p8, %p169_p7 }
  0x35   :  { %177 = shalt.err (!%p174_p9)
}
  0x36   :  { %95 = dma.vmem_to_hbm [thread:$0]  %s90_s7, 256, %s251_s2, [#allocation4], %s185_s19, %s185_s19, %s186_s20  }
  0x37   :  { %182 = dma.done.wait [#allocation4], 256  }
  0x38   :  { %183 = vsyncadd [#allocation4], 4294967040 }
  0x39   :  { %99 = vsyncpa [#allocation3], 1 }
  0x3a   :  { %100 = vsyncpa [#allocation6], 1 }
  0x3b   :  { %101 = vsyncpa [#allocation4], 1 }

</bundles_post_ra>
